<compile_context>
chip_gen: v6e
topology: v6e:2x2x1
jax: 0.10.0
libtpu: 0.0.40
codegen_flags: <defaults>
</compile_context>

<pallas_src>
import numpy as np
import jax
import jax.numpy as jnp
from jax.experimental import pallas as pl
from jax.experimental.pallas import tpu as pltpu

TIME_EMBED_DIM = 16
HIDDEN = 64


def diffusion_kernel(x_ref, t_ref, div_ref, w1_ref, b1_ref,
                     w2_ref, b2_ref, w3_ref, b3_ref, o_ref):
    E = TIME_EMBED_DIM
    x = x_ref[...]                      # (1, Bt)
    t = t_ref[...]                      # (1, Bt)
    div = div_ref[...]                  # (E/2, 1)

    # sinusoidal time embedding, feature-major: (E, Bt)
    ang = div * t                       # (E/2, Bt)
    temb = jnp.concatenate([jnp.sin(ang), jnp.cos(ang)], axis=0)

    # fc1: W1 is packed as [temb cols (E) | x col (1)] -> static lane views.
    w1_sc = w1_ref[:, 0:E]              # (64, E)   fused sin+cos weights
    w1_x = w1_ref[:, E:E + 1]           # (64, 1)   K=1 x weight
    h1 = jnp.dot(w1_sc, temb, preferred_element_type=jnp.float32)
    h1 = h1 + w1_x * x + b1_ref[...]    # K=1 term as a VPU broadcast mul-add
    h1 = jnp.maximum(h1, 0.0)

    # fc2 + ReLU
    h2 = jnp.dot(w2_ref[...], h1, preferred_element_type=jnp.float32) + b2_ref[...]
    h2 = jnp.maximum(h2, 0.0)

    # fc3 (bias is an SMEM scalar)
    o_ref[...] = (jnp.dot(w3_ref[...], h2, preferred_element_type=jnp.float32)
                  + b3_ref[0])


def diffusion_forward(x, t, params, *, block_b=256):
    """x: (B, 1) f32, t: (B,) int/float timesteps.  Returns (B, 1) f32."""
    B = x.shape[0]
    E = TIME_EMBED_DIM

    # Pad the batch up to a multiple of the lane tile (keeps every block
    # (8,128)-legal; padded columns are computed but sliced off afterwards).
    Bp = ((B + block_b - 1) // block_b) * block_b
    xb = x.reshape(1, B).astype(jnp.float32)
    tb = jnp.asarray(t).reshape(1, B).astype(jnp.float32)
    if Bp != B:
        xb = jnp.pad(xb, ((0, 0), (0, Bp - B)))
        tb = jnp.pad(tb, ((0, 0), (0, Bp - B)))

    div_term = jnp.exp(
        jnp.arange(0, E, 2, dtype=jnp.float32) * (-np.log(10000.0) / E)
    ).reshape(E // 2, 1)

    # Repack W1 (out, 1+E) so the temb columns are lane-aligned at 0 and the
    # x column sits at lane E (single array -> one resident DMA).
    w1 = params["w1"]
    w1_packed = jnp.concatenate([w1[:, 1:], w1[:, :1]], axis=1)   # (64, E+1)
    b1 = params["b1"].reshape(HIDDEN, 1)
    w2 = params["w2"]                                             # (64, 64)
    b2 = params["b2"].reshape(HIDDEN, 1)
    w3 = params["w3"]                                             # (1, 64)
    b3 = params["b3"].reshape(1).astype(jnp.float32)

    grid = (Bp // block_b,)
    lane_spec = pl.BlockSpec((1, block_b), lambda i: (0, i))
    resident = lambda a: pl.BlockSpec(a.shape, lambda i: (0, 0))

    out_fm = pl.pallas_call(
        diffusion_kernel,
        out_shape=jax.ShapeDtypeStruct((1, Bp), jnp.float32),
        grid=grid,
        in_specs=[
            lane_spec,                    # x       (1, Bp) -> (1, Bt)
            lane_spec,                    # t       (1, Bp) -> (1, Bt)
            resident(div_term),           # div     (E/2, 1), VMEM-resident
            resident(w1_packed),          # W1      (64, E+1)
            resident(b1),                 # b1      (64, 1)
            resident(w2),                 # W2      (64, 64)
            resident(b2),                 # b2      (64, 1)
            resident(w3),                 # W3      (1, 64)
            pl.BlockSpec(memory_space=pltpu.MemorySpace.SMEM),  # b3 scalar
        ],
        out_specs=lane_spec,
        compiler_params=pltpu.CompilerParams(
            dimension_semantics=("parallel",)),
    )(xb, tb, div_term, w1_packed, b1, w2, b2, w3, b3)

    return out_fm[0, :B].reshape(B, 1)


def init_params(key):
    """Parameters in PyTorch-native nn.Linear layout: W is (out, in)."""
    E = TIME_EMBED_DIM
    k1, k2, k3, k4, k5, k6 = jax.random.split(key, 6)
    return {
        "w1": jax.random.normal(k1, (HIDDEN, 1 + E), jnp.float32) * 0.1,
        "b1": jax.random.normal(k4, (HIDDEN,), jnp.float32) * 0.1,
        "w2": jax.random.normal(k2, (HIDDEN, HIDDEN), jnp.float32) * 0.1,
        "b2": jax.random.normal(k5, (HIDDEN,), jnp.float32) * 0.1,
        "w3": jax.random.normal(k3, (1, HIDDEN), jnp.float32) * 0.1,
        "b3": jax.random.normal(k6, (1,), jnp.float32) * 0.1,
    }


def reference_forward(x, t, params):
    """Pure-JAX reference reproducing the PyTorch forward exactly."""
    E = TIME_EMBED_DIM
    pos = t.reshape(-1, 1).astype(jnp.float32)
    div_term = jnp.exp(jnp.arange(0, E, 2, dtype=jnp.float32) * (-np.log(10000.0) / E))
    temb = jnp.concatenate([jnp.sin(pos * div_term), jnp.cos(pos * div_term)], axis=1)
    xt = jnp.concatenate([x, temb], axis=1)
    h = jax.nn.relu(xt @ params["w1"].T + params["b1"])
    h = jax.nn.relu(h @ params["w2"].T + params["b2"])
    return h @ params["w3"].T + params["b3"]


if __name__ == "__main__":
    key = jax.random.PRNGKey(0)
    kp, kx, kt = jax.random.split(key, 3)

    B = 8
    params = init_params(kp)
    x = jax.random.normal(kx, (B, 1), jnp.float32)
    t = jax.random.randint(kt, (B,), 1, 1000)

    out = jax.block_until_ready(diffusion_forward(x, t, params))
    ref = reference_forward(x, t, params)

    assert out.shape == (B, 1)
    np.testing.assert_allclose(np.asarray(out), np.asarray(ref), rtol=1e-5, atol=1e-5)

    print("KERNEL_OK")
</pallas_src>

<mosaic_0001>
module attributes {stable_mosaic.version = 11 : i64} {
  func.func @diffusion_kernel(%arg0: i32, %arg1: memref<1x256xf32, #tpu.memory_space<vmem>>, %arg2: memref<1x256xf32, #tpu.memory_space<vmem>>, %arg3: memref<8x1xf32, #tpu.memory_space<vmem>>, %arg4: memref<64x17xf32, #tpu.memory_space<vmem>>, %arg5: memref<64x1xf32, #tpu.memory_space<vmem>>, %arg6: memref<64x64xf32, #tpu.memory_space<vmem>>, %arg7: memref<64x1xf32, #tpu.memory_space<vmem>>, %arg8: memref<1x64xf32, #tpu.memory_space<vmem>>, %arg9: memref<1xf32, #tpu.memory_space<smem>>, %arg10: memref<1x256xf32, #tpu.memory_space<vmem>>) attributes {dimension_semantics = [#tpu.dimension_semantics<parallel>], iteration_bounds = array<i64: 1>, scalar_prefetch = 0 : i64, scratch_operands = 0 : i64, tpu.core_type = #tpu.core_type<tc>, window_params = [{transform_indices = @transform_0, window_bounds = array<i64: 1, 256>}, {transform_indices = @transform_1, window_bounds = array<i64: 1, 256>}, {pipeline_mode = #tpu.pipeline_mode<synchronous>, transform_indices = @transform_2, window_bounds = array<i64: 8, 1>}, {pipeline_mode = #tpu.pipeline_mode<synchronous>, transform_indices = @transform_3, window_bounds = array<i64: 64, 17>}, {pipeline_mode = #tpu.pipeline_mode<synchronous>, transform_indices = @transform_4, window_bounds = array<i64: 64, 1>}, {pipeline_mode = #tpu.pipeline_mode<synchronous>, transform_indices = @transform_5, window_bounds = array<i64: 64, 64>}, {pipeline_mode = #tpu.pipeline_mode<synchronous>, transform_indices = @transform_6, window_bounds = array<i64: 64, 1>}, {pipeline_mode = #tpu.pipeline_mode<synchronous>, transform_indices = @transform_7, window_bounds = array<i64: 1, 64>}, {transform_indices = @transform_8, window_bounds = array<i64: 1>}, {transform_indices = @transform_9, window_bounds = array<i64: 1, 256>}]} {
    %c0 = arith.constant 0 : index
    %c0_0 = arith.constant 0 : index
    %0 = vector.load %arg1[%c0, %c0_0] : memref<1x256xf32, #tpu.memory_space<vmem>>, vector<1x256xf32>
    %c0_1 = arith.constant 0 : index
    %c0_2 = arith.constant 0 : index
    %1 = vector.load %arg2[%c0_1, %c0_2] : memref<1x256xf32, #tpu.memory_space<vmem>>, vector<1x256xf32>
    %c0_3 = arith.constant 0 : index
    %c0_4 = arith.constant 0 : index
    %2 = vector.load %arg3[%c0_3, %c0_4] : memref<8x1xf32, #tpu.memory_space<vmem>>, vector<8x1xf32>
    %3 = vector.broadcast %2 : vector<8x1xf32> to vector<8x256xf32>
    %4 = vector.broadcast %1 : vector<1x256xf32> to vector<8x256xf32>
    %5 = arith.mulf %3, %4 : vector<8x256xf32>
    %6 = math.sin %5 : vector<8x256xf32>
    %7 = math.cos %5 : vector<8x256xf32>
    %8 = tpu.concatenate %6, %7 in 0 : vector<8x256xf32>, vector<8x256xf32> -> vector<16x256xf32>
    %c0_5 = arith.constant 0 : index
    %c0_6 = arith.constant 0 : index
    %9 = vector.load %arg4[%c0_5, %c0_6] : memref<64x17xf32, #tpu.memory_space<vmem>>, vector<64x16xf32>
    %c0_7 = arith.constant 0 : index
    %c16 = arith.constant 16 : index
    %10 = vector.load %arg4[%c0_7, %c16] : memref<64x17xf32, #tpu.memory_space<vmem>>, vector<64x1xf32>
    %cst = arith.constant dense<0.000000e+00> : vector<64x256xf32>
    %11 = tpu.matmul %9, %8, %cst {dimension_numbers = #tpu.dot_dimension_numbers<[1], [0], [0], [1], [0, 0, 1, 1], [], []>} : vector<64x16xf32>, vector<16x256xf32>, vector<64x256xf32> -> vector<64x256xf32>
    %12 = vector.broadcast %10 : vector<64x1xf32> to vector<64x256xf32>
    %13 = vector.broadcast %0 : vector<1x256xf32> to vector<64x256xf32>
    %14 = arith.mulf %12, %13 : vector<64x256xf32>
    %15 = arith.addf %11, %14 : vector<64x256xf32>
    %c0_8 = arith.constant 0 : index
    %c0_9 = arith.constant 0 : index
    %16 = vector.load %arg5[%c0_8, %c0_9] : memref<64x1xf32, #tpu.memory_space<vmem>>, vector<64x1xf32>
    %17 = vector.broadcast %16 : vector<64x1xf32> to vector<64x256xf32>
    %18 = arith.addf %15, %17 : vector<64x256xf32>
    %cst_10 = arith.constant 0.000000e+00 : f32
    %19 = vector.broadcast %cst_10 : f32 to vector<64x256xf32>
    %20 = arith.maximumf %18, %19 : vector<64x256xf32>
    %c0_11 = arith.constant 0 : index
    %c0_12 = arith.constant 0 : index
    %21 = vector.load %arg6[%c0_11, %c0_12] : memref<64x64xf32, #tpu.memory_space<vmem>>, vector<64x64xf32>
    %cst_13 = arith.constant dense<0.000000e+00> : vector<64x256xf32>
    %22 = tpu.matmul %21, %20, %cst_13 {dimension_numbers = #tpu.dot_dimension_numbers<[1], [0], [0], [1], [0, 0, 1, 1], [], []>} : vector<64x64xf32>, vector<64x256xf32>, vector<64x256xf32> -> vector<64x256xf32>
    %c0_14 = arith.constant 0 : index
    %c0_15 = arith.constant 0 : index
    %23 = vector.load %arg7[%c0_14, %c0_15] : memref<64x1xf32, #tpu.memory_space<vmem>>, vector<64x1xf32>
    %24 = vector.broadcast %23 : vector<64x1xf32> to vector<64x256xf32>
    %25 = arith.addf %22, %24 : vector<64x256xf32>
    %cst_16 = arith.constant 0.000000e+00 : f32
    %26 = vector.broadcast %cst_16 : f32 to vector<64x256xf32>
    %27 = arith.maximumf %25, %26 : vector<64x256xf32>
    %c0_17 = arith.constant 0 : index
    %c0_18 = arith.constant 0 : index
    %28 = vector.load %arg8[%c0_17, %c0_18] : memref<1x64xf32, #tpu.memory_space<vmem>>, vector<1x64xf32>
    %cst_19 = arith.constant dense<0.000000e+00> : vector<1x256xf32>
    %29 = tpu.matmul %28, %27, %cst_19 {dimension_numbers = #tpu.dot_dimension_numbers<[1], [0], [0], [1], [0, 0, 1, 1], [], []>} : vector<1x64xf32>, vector<64x256xf32>, vector<1x256xf32> -> vector<1x256xf32>
    %c0_20 = arith.constant 0 : index
    %30 = memref.load %arg9[%c0_20] : memref<1xf32, #tpu.memory_space<smem>>
    %31 = vector.broadcast %30 : f32 to vector<1x256xf32>
    %32 = arith.addf %29, %31 : vector<1x256xf32>
    %c0_21 = arith.constant 0 : index
    %c0_22 = arith.constant 0 : index
    %33 = vector.load %arg10[%c0_21, %c0_22] : memref<1x256xf32, #tpu.memory_space<vmem>>, vector<1x256xf32>
    tpu.vector_store %arg10[%c0_21, %c0_22], %32 {strides = array<i32>} : memref<1x256xf32, #tpu.memory_space<vmem>>, vector<1x256xf32>,
    return
  }
  func.func @transform_0(%arg0: i32) -> (i32, i32) {
    %c0_i32 = arith.constant 0 : i32
    %c0_i32_0 = arith.constant 0 : i32
    return %c0_i32, %arg0 : i32, i32
  }
  func.func @transform_1(%arg0: i32) -> (i32, i32) {
    %c0_i32 = arith.constant 0 : i32
    %c0_i32_0 = arith.constant 0 : i32
    return %c0_i32, %arg0 : i32, i32
  }
  func.func @transform_2(%arg0: i32) -> (i32, i32) {
    %c0_i32 = arith.constant 0 : i32
    %c0_i32_0 = arith.constant 0 : i32
    %c0_i32_1 = arith.constant 0 : i32
    return %c0_i32, %c0_i32_0 : i32, i32
  }
  func.func @transform_3(%arg0: i32) -> (i32, i32) {
    %c0_i32 = arith.constant 0 : i32
    %c0_i32_0 = arith.constant 0 : i32
    %c0_i32_1 = arith.constant 0 : i32
    return %c0_i32, %c0_i32_0 : i32, i32
  }
  func.func @transform_4(%arg0: i32) -> (i32, i32) {
    %c0_i32 = arith.constant 0 : i32
    %c0_i32_0 = arith.constant 0 : i32
    %c0_i32_1 = arith.constant 0 : i32
    return %c0_i32, %c0_i32_0 : i32, i32
  }
  func.func @transform_5(%arg0: i32) -> (i32, i32) {
    %c0_i32 = arith.constant 0 : i32
    %c0_i32_0 = arith.constant 0 : i32
    %c0_i32_1 = arith.constant 0 : i32
    return %c0_i32, %c0_i32_0 : i32, i32
  }
  func.func @transform_6(%arg0: i32) -> (i32, i32) {
    %c0_i32 = arith.constant 0 : i32
    %c0_i32_0 = arith.constant 0 : i32
    %c0_i32_1 = arith.constant 0 : i32
    return %c0_i32, %c0_i32_0 : i32, i32
  }
  func.func @transform_7(%arg0: i32) -> (i32, i32) {
    %c0_i32 = arith.constant 0 : i32
    %c0_i32_0 = arith.constant 0 : i32
    %c0_i32_1 = arith.constant 0 : i32
    return %c0_i32, %c0_i32_0 : i32, i32
  }
  func.func @transform_8(%arg0: i32) -> i32 {
    %c0_i32 = arith.constant 0 : i32
    %c0_i32_0 = arith.constant 0 : i32
    return %c0_i32 : i32
  }
  func.func @transform_9(%arg0: i32) -> (i32, i32) {
    %c0_i32 = arith.constant 0 : i32
    %c0_i32_0 = arith.constant 0 : i32
    return %c0_i32, %arg0 : i32, i32
  }
}

</mosaic_0001>

<bundles_post_ra>
// kernel: tpu_custom_call.1
= control target key start
LH: loop header
LB: loop body
LE: loop exit
PB: predicated region body
PF: predicated region fallthrough
CT: control target
= control target key end

     0   :  { %v1165_v1 = vmov 0   ;;  %s1571_s0 = inlined_call_operand.vmem [shape: f32[1,256], index: 0, kind: input, shape index: {}]   ;;  %s1572_s1 = inlined_call_operand.vmem [shape: f32[1,256], index: 1, kind: input, shape index: {}]   ;;  %s1573_s2 = inlined_call_operand.vmem [shape: f32[8,1], index: 2, kind: input, shape index: {}]   ;;  %s1574_s3 = inlined_call_operand.vmem [shape: f32[64,17], index: 3, kind: input, shape index: {}]   ;;  %s1575_s4 = inlined_call_operand.vmem [shape: f32[64,1], index: 4, kind: input, shape index: {}]   ;;  %s1576_s5 = inlined_call_operand.vmem [shape: f32[64,64], index: 5, kind: input, shape index: {}]   ;;  %s1577_s6 = inlined_call_operand.vmem [shape: f32[64,1], index: 6, kind: input, shape index: {}]   ;;  %s1578_s7 = inlined_call_operand.vmem [shape: f32[1,64], index: 7, kind: input, shape index: {}]   ;;  %s1579_s8 = inlined_call_operand.<no memory space> [shape: f32[1], index: 8, kind: input, shape index: {}]   ;;  %s1580_s9 = inlined_call_operand.hbm [shape: f32[1,256], index: 9, kind: output, shape index: {}]  }
   0x1   :  { %v36_v0 = vld [vmem:[%s1573_s2] sm:$0xff]  ;;  %1130 = vset.pattern.permute.xlu0 %v1165_v1 }
   0x2   :  { %39 = vperm.xlu0 %1130, %v36_v0  }
   0x3   :  { %15 = vsyncpa [#allocation4], 0  ;;  %v1166_v2 = vmov 0.0   ;;  %v43_v3 = vlaneseq  ;;  %v35_v7 = vld [vmem:[%s1572_s1] sm:$0x3]  ;;  %v1251_v13 = vld [vmem:[%s1574_s3 + $0x30] sm:$0xff] }
   0x4   :  { %625 = vmatprep.mubr.f32.mxu0 %v1166_v2  ;;  %899 = vmatprep.mubr.f32.mxu1 %v1166_v2  ;;  %v1256_v14 = vld [vmem:[%s1574_s3 + $0x38] sm:$0xff]  ;;  %v1167_v15 = vmov 16   ;;  %v1267_v22 = vld [vmem:[%s1574_s3 + $0x20] sm:$0xff]  ;;  %v1272_v23 = vld [vmem:[%s1574_s3 + $0x28] sm:$0xff]  ;;  %v1168_v45 = vmov 2102212464  }
   0x5   :  { %v1233_v4 = vshrl.u32 %v43_v3, 7  ;;  %1132 = vset.pattern.permute.xlu1 %v1167_v15  ;;  %v681_v30 = vld [vmem:[%s1575_s4 + $0x38] sm:$0xff]  ;;  %v680_v39 = vld [vmem:[%s1575_s4 + $0x30] sm:$0xff]  ;;  %v1169_v47 = vmov 920167782   ;;  %v679_v57 = vld [vmem:[%s1575_s4 + $0x28] sm:$0xff] }
   0x6   :  { %1131 = vset.pattern.permute.xlu0 %v1167_v15  ;;  %509 = vperm.xlu1 %1132, %v1251_v13   ;;  %v1286_v31 = vld [vmem:[%s1574_s3 + $0x18] sm:$0xff]  ;;  %v1300_v40 = vld [vmem:[%s1574_s3 + $0x10] sm:$0xff]  ;;  %v1170_v51 = vmov 683565275   ;;  %v1171_v53 = vmov 2475754826  }
   0x7   :  { %v45_v5 = vsub.s32 0, %v1233_v4  ;;  %v49_v6 = vsub.s32 1, %v1233_v4  ;;  %514 = vperm.xlu0 %1131, %v1256_v14   ;;  %v1172_v55 = vmov 2131351028   ;;  %v1173_v58 = vmov 1326507024  }
   0x8   :  { %v1326_v63 = vld [vmem:[%s1574_s3 + $0x8] sm:$0xff]  ;;  %s1175_s28 = smov [#allocation3]  }
   0x9   :  { %v46_v8 = vrot.slane %v35_v7, %v45_v5  ;;  %v50_v9 = vrot.slane %v35_v7, %v49_v6 }
   0xa   :  { %504 = vperm.xlu1 %1132, %v1272_v23  }
   0xb   :  { %499 = vperm.xlu0 %1131, %v1267_v22  }
   0xe   :  { %1133 = vset.pattern.permute.xlu1 %v1165_v1 }
   0xf   :  { %494 = vperm.xlu0 %1131, %v1286_v31   ;;  %719 = vperm.xlu1 %1133, %v681_v30  }
  0x13   :  { %489 = vperm.xlu0 %1131, %v1300_v40   ;;  %714 = vperm.xlu1 %1133, %v680_v39  }
  0x17   :  { %484 = vperm.xlu0 %1131, %v1326_v63   ;;  %709 = vperm.xlu1 %1133, %v679_v57  }
  0x7d   :  { %v40_v10 = vpop.permute.xlu0 %39 }
  0x7e   :  { %v1244_v11 = vmul.f32 %v46_v8, %v40_v10  ;;  %v1246_v12 = vmul.f32 %v50_v9, %v40_v10 }
  0x80   :  { %v58_v16 = vand.u32 2139095040, %v1244_v11  ;;  %v162_v17 = vand.u32 2139095040, %v1246_v12  ;;  %v159_v18 = vand.u32 2147483647, %v1246_v12  ;;  %v55_v19 = vand.u32 2147483647, %v1244_v11 }
  0x81   :  { %vm161_vm14 = vcmp.lt.s32.totalorder %v1246_v12, 0 }
  0x82   :  { %v59_v20 = vshrl.u32 %v58_v16, 23  ;;  %v163_v21 = vshrl.u32 %v162_v17, 23  ;;  %v166_v26 = vand.u32 8388607, %v159_v18  ;;  %v62_v27 = vand.u32 8388607, %v55_v19 }
  0x83   :  { %vm1453_vm15 = vcmp.le.f32.partialorder %v159_v18, 0.7853982 }
  0x84   :  { %v1078_v24 = vadd.s32 4294967169, %v59_v20  ;;  %v1082_v25 = vadd.s32 4294967169, %v163_v21  ;;  %v167_v32 = vor.u32 8388608, %v166_v26  ;;  %v63_v33 = vor.u32 8388608, %v62_v27 }
  0x86   :  { %v65_v28 = vadd.s32 1, %v1078_v24  ;;  %v169_v29 = vadd.s32 1, %v1082_v25  ;;  %v1307_v43 = vshll.u32 %v167_v32, 8  ;;  %v1309_v44 = vshll.u32 %v63_v33, 8  ;;  %v678_v25 = vld [vmem:[%s1575_s4 + $0x20] sm:$0xff] }
  0x87   :  { %704 = vperm.xlu1 %1133, %v678_v25  }
  0x88   :  { %vm66_vm0 = vcmp.gt.s32.totalorder %v65_v28, 0  ;;  %vm170_vm1 = vcmp.gt.s32.totalorder %v169_v29, 0 }
  0x89   :  { %v67_v34 = vsel %vm66_vm0, %v65_v28, 0  ;;  %v171_v35 = vsel %vm170_vm1, %v169_v29, 0  ;;  %v1340_v28 = vld [vmem:[%s1574_s3] sm:$0xff]  ;;  %vm57_vm0 = vcmp.lt.s32.totalorder %v1244_v11, 0  ;;  %vm56_vm1 = vcmp.le.f32.partialorder %v55_v19, 0.7853982 }
  0x8a   :  { %v1290_v36 = vshrl.u32 %v67_v34, 5  ;;  %v1292_v37 = vand.u32 31, %v67_v34  ;;  %v173_v38 = vand.u32 31, %v171_v35  ;;  %v1305_v42 = vshrl.u32 %v171_v35, 5  ;;  %479 = vperm.xlu0 %1131, %v1340_v28  }
  0x8c   :  { %v1303_v41 = vsub.s32 32, %v1292_v37  ;;  %v81_v46 = vshll.u32 %v1168_v45, %v1292_v37  ;;  %v84_v48 = vshll.u32 %v1169_v47, %v1292_v37  ;;  %vm90_vm2 = vcmp.lt.s32.totalorder %v1290_v36, 4 }
  0x8d   :  { %v174_v49 = vsub.s32 32, %v173_v38  ;;  %v176_v52 = vshll.u32 %v1170_v51, %v173_v38  ;;  %v179_v54 = vshll.u32 %v1171_v53, %v173_v38  ;;  %v182_v56 = vshll.u32 %v1172_v55, %v173_v38 }
  0x8e   :  { %v82_v50 = vshrl.u32 %v1169_v47, %v1303_v41  ;;  %v85_v59 = vshrl.u32 %v1173_v58, %v1303_v41  ;;  %v185_v0 = vshll.u32 %v1168_v45, %v173_v38  ;;  %v188_v8 = vshll.u32 %v1169_v47, %v173_v38  ;;  %1134 = vset.pattern.permute.xlu0 %v1165_v1  ;;  %v676_v1 = vld [vmem:[%s1575_s4 + $0x10] sm:$0xff] }
  0x8f   :  { %v177_v60 = vshrl.u32 %v1171_v53, %v174_v49  ;;  %v180_v61 = vshrl.u32 %v1172_v55, %v174_v49  ;;  %v183_v62 = vshrl.u32 %v1168_v45, %v174_v49  ;;  %v186_v7 = vshrl.u32 %v1169_v47, %v174_v49 }
  0x90   :  { %v189_v9 = vshrl.u32 %v1173_v58, %v174_v49  ;;  %v175_v10 = vshrl.u32 %v1170_v51, %v174_v49  ;;  %v83_v20 = vor.u32 %v82_v50, %v81_v46  ;;  %vm191_vm3 = vcmp.lt.s32.totalorder %v1305_v42, 1  ;;  %v677_v49 = vld [vmem:[%s1575_s4 + $0x18] sm:$0xff]  ;;  %v675_v50 = vld [vmem:[%s1575_s4 + $0x8] sm:$0xff] }
  0x91   :  { %v178_v15 = vor.u32 %v177_v60, %v176_v52  ;;  %v181_v16 = vor.u32 %v180_v61, %v179_v54  ;;  %v184_v17 = vor.u32 %v183_v62, %v182_v56  ;;  %v187_v21 = vor.u32 %v186_v7, %v185_v0  ;;  %699 = vperm.xlu1 %1133, %v677_v49  }
  0x92   :  { %v190_v24 = vor.u32 %v189_v9, %v188_v8  ;;  %v86_v26 = vor.u32 %v85_v59, %v84_v48  ;;  %vm193_vm4 = vcmp.lt.s32.totalorder %v1305_v42, 3  ;;  %vm194_vm5 = vcmp.lt.s32.totalorder %v1305_v42, 4  ;;  %689 = vperm.xlu0 %1134, %v675_v50  }
  0x93   :  { %v195_v27 = vsel %vm191_vm3, %v175_v10, %v178_v15  ;;  %v196_v29 = vsel %vm194_vm5, %v184_v17, 2102212464  ;;  %v199_v30 = vsel %vm191_vm3, %v178_v15, %v181_v16  ;;  %v200_v32 = vsel %vm194_vm5, %v187_v21, 920167782 }
  0x94   :  { %v203_v33 = vsel %vm191_vm3, %v181_v16, %v184_v17  ;;  %vm192_vm6 = vcmp.lt.s32.totalorder %v1305_v42, 2  ;;  %v197_v34 = vsel %vm193_vm4, %v181_v16, %v196_v29  ;;  %v201_v35 = vsel %vm193_vm4, %v184_v17, %v200_v32 }
  0x95   :  { %v204_v38 = vsel %vm194_vm5, %v190_v24, 1326507024  ;;  %v96_v39 = vsel %vm90_vm2, %v83_v20, 920167782  ;;  %v198_v46 = vsel %vm192_vm6, %v195_v27, %v197_v34  ;;  %v202_v47 = vsel %vm192_vm6, %v199_v30, %v201_v35  ;;  %694 = vperm.xlu1 %1133, %v676_v1   ;;  %v766_v27 = vld [vmem:[%s1577_s6 + $0x20] sm:$0xff] }
  0x96   :  { %v205_v48 = vsel %vm193_vm4, %v187_v21, %v204_v38  ;;  %v1359_v54 = vmul.u32.u64.low %v1307_v43, %v202_v47  ;;  %v1360_v56 = vmul.u32.u64.high %v1307_v43, %v202_v47, %v1359_v54  ;;  %v72_v57 = vshll.u32 %v1170_v51, %v1292_v37  ;;  %v764_v47 = vld [vmem:[%s1577_s6 + $0x10] sm:$0xff] }
  0x97   :  { %v206_v52 = vsel %vm192_vm6, %v203_v33, %v205_v48  ;;  %v73_v59 = vshrl.u32 %v1171_v53, %v1303_v41  ;;  %v75_v60 = vshll.u32 %v1171_v53, %v1292_v37  ;;  %v100_v61 = vsel %vm90_vm2, %v86_v26, 1326507024 }
  0x98   :  { %v1366_v42 = vmul.u32.u64.low %v1307_v43, %v206_v52  ;;  %v1367_v58 = vmul.u32.u64.high %v1307_v43, %v206_v52, %v1366_v42  ;;  %v76_v62 = vshrl.u32 %v1172_v55, %v1303_v41  ;;  %v78_v0 = vshll.u32 %v1172_v55, %v1292_v37  ;;  %v768_v37 = vld [vmem:[%s1577_s6 + $0x30] sm:$0xff] }
  0x99   :  { %v79_v7 = vshrl.u32 %v1168_v45, %v1303_v41  ;;  %v214_v8 = vmul.u32 %v1307_v43, %v198_v46  ;;  %v71_v9 = vshrl.u32 %v1170_v51, %v1303_v41  ;;  %v74_v53 = vor.u32 %v73_v59, %v72_v57  ;;  %802 = vperm.xlu0 %1134, %v768_v37   ;;  %v769_v46 = vld [vmem:[%s1577_s6 + $0x38] sm:$0xff]  ;;  %v767_v57 = vld [vmem:[%s1577_s6 + $0x28] sm:$0xff]  ;;  %v762_v42 = vld [vmem:[%s1577_s6] sm:$0xff] }
  0x9a   :  { %vm87_vm7 = vcmp.lt.s32.totalorder %v1290_v36, 1  ;;  %v217_v45 = vadd.s32 1, %v1360_v56  ;;  %v77_v55 = vor.u32 %v76_v62, %v75_v60  ;;  %vm89_vm8 = vcmp.lt.s32.totalorder %v1290_v36, 3 }
  0x9b   :  { %v80_v10 = vor.u32 %v79_v7, %v78_v0  ;;  %vm216_vm9 = vc.u32 %v1367_v58, %v1359_v54  ;;  %vm88_vm10 = vcmp.lt.s32.totalorder %v1290_v36, 2  ;;  %v91_v41 = vsel %vm87_vm7, %v71_v9, %v74_v53  ;;  %v763_v9 = vld [vmem:[%s1577_s6 + $0x8] sm:$0xff] }
  0x9c   :  { %v101_v43 = vsel %vm89_vm8, %v83_v20, %v100_v61  ;;  %v218_v51 = vsel %vm216_vm9, %v217_v45, %v1360_v56  ;;  %v95_v16 = vsel %vm87_vm7, %v74_v53, %v77_v55  ;;  %v674_v20 = vld [vmem:[%s1575_s4] sm:$0xff]  ;;  %v765_v61 = vld [vmem:[%s1577_s6 + $0x18] sm:$0xff]  ;;  %v215_v45 = vadd.s32 %v1359_v54, %v1367_v58 }
  0x9d   :  { %v92_v15 = vsel %vm90_vm2, %v80_v10, 2102212464  ;;  %v97_v17 = vsel %vm89_vm8, %v80_v10, %v96_v39  ;;  %v219_v21 = vadd.s32 %v218_v51, %v214_v8  ;;  %v99_v26 = vsel %vm87_vm7, %v77_v55, %v80_v10  ;;  %684 = vperm.xlu1 %1133, %v674_v20   ;;  %792 = vperm.xlu0 %1134, %v766_v27  }
  0x9e   :  { %v93_v24 = vsel %vm89_vm8, %v77_v55, %v92_v15  ;;  %v98_v25 = vsel %vm88_vm10, %v95_v16, %v97_v17  ;;  %v102_v29 = vsel %vm88_vm10, %v99_v26, %v101_v43  ;;  %vm251_vm5 = vweird.f32 %v1246_v12 }
  0x9f   :  { %v1413_v30 = vmul.u32.u64.low %v1309_v44, %v98_v25  ;;  %v1414_v32 = vmul.u32.u64.high %v1309_v44, %v98_v25, %v1413_v30  ;;  %v220_v33 = vadd.s32 536870912, %v219_v21  ;;  %v94_v38 = vsel %vm88_vm10, %v91_v41, %v93_v24 }
  0xa0   :  { %v1417_v34 = vmul.u32.u64.low %v1309_v44, %v102_v29  ;;  %v1418_v35 = vmul.u32.u64.high %v1309_v44, %v102_v29, %v1417_v34  ;;  %v110_v50 = vmul.u32 %v1309_v44, %v94_v38 }
  0xa1   :  { %v1422_v39 = vshrl.u32 %v220_v33, 30  ;;  %v113_v48 = vadd.s32 1, %v1414_v32  ;;  %807 = vperm.xlu1 %1133, %v769_v46   ;;  %782 = vperm.xlu0 %1134, %v764_v47  }
  0xa2   :  { %vm112_vm11 = vc.u32 %v1418_v35, %v1413_v30  ;;  %v111_v29 = vadd.s32 %v1413_v30, %v1418_v35 }
  0xa3   :  { %v222_v49 = vshll.u32 %v1422_v39, 30  ;;  %v114_v36 = vsel %vm112_vm11, %v113_v48, %v1414_v32 }
  0xa4   :  { %v115_v56 = vadd.s32 %v114_v36, %v110_v50  ;;  %v245_v36 = vsub.s32 4, %v1422_v39 }
  0xa5   :  { %v223_v52 = vsub.s32 %v219_v21, %v222_v49  ;;  %797 = vperm.xlu1 %1133, %v767_v57   ;;  %772 = vperm.xlu0 %1134, %v762_v42  }
  0xa6   :  { %v116_v60 = vadd.s32 536870912, %v115_v56  ;;  %v246_v42 = vsel %vm161_vm14, %v245_v36, %v1422_v39 }
  0xa7   :  { %v225_v59 = vsub.s32 0, %v223_v52 }
  0xa8   :  { %v117_v62 = vshrl.u32 %v116_v60, 30 }
  0xa9   :  { %v1083_v44 = vmin.u32 %v225_v59, %v223_v52  ;;  %787 = vperm.xlu1 %1133, %v765_v61  }
  0xaa   :  { %v118_v7 = vshll.u32 %v117_v62, 30  ;;  %v141_v18 = vsub.s32 4, %v117_v62 }
  0xab   :  { %v227_v0 = vclz %v1083_v44  ;;  %v248_v44 = vsel %vm1453_vm15, 0, %v246_v42 }
  0xac   :  { %v119_v53 = vsub.s32 %v115_v56, %v118_v7  ;;  %v459_v7 = vand.u32 3, %v248_v44 }
  0xad   :  { %v1084_v8 = vadd.s32 4294967294, %v227_v0  ;;  %777 = vperm.xlu1 %1133, %v763_v9   ;;  %v142_v0 = vsel %vm57_vm0, %v141_v18, %v117_v62 }
  0xae   :  { %v121_v37 = vsub.s32 0, %v119_v53  ;;  %v144_v9 = vsel %vm56_vm1, 0, %v142_v0  ;;  %vm464_vm2 = vcmp.eq.s32.totalorder %v459_v7, 2  ;;  %vm461_vm3 = vcmp.eq.s32.totalorder %v459_v7, 0 }
  0xaf   :  { %vm1085_vm12 = vcmp.lt.s32.totalorder %v1084_v8, 0  ;;  %v148_v19 = vadd.s32 3, %v144_v9  ;;  %vm460_vm4 = vcmp.lt.s32.totalorder %v459_v7, 2 }
  0xb0   :  { %v230_v1 = vsel %vm1085_vm12, 0, %v1084_v8  ;;  %v1079_v41 = vmin.u32 %v121_v37, %v119_v53 }
  0xb1   :  { %v231_v55 = vsub.s32 32, %v230_v1  ;;  %v235_v10 = vsub.s32 4294967266, %v230_v1  ;;  %v232_v43 = vshll.u32 %v223_v52, %v230_v1 }
  0xb2   :  { %v123_v16 = vclz %v1079_v41 }
  0xb3   :  { %v233_v51 = vshrl.u32 %v215_v45, %v231_v55  ;;  %v236_v15 = vadd.s32 127, %v235_v10 }
  0xb4   :  { %v1080_v24 = vadd.s32 4294967294, %v123_v16 }
  0xb5   :  { %v234_v17 = vor.u32 %v233_v51, %v232_v43  ;;  %v237_v21 = vshll.u32 %v236_v15, 23  ;;  %v356_v43 = vand.u32 3, %v144_v9  ;;  %v149_v51 = vand.u32 3, %v148_v19 }
  0xb6   :  { %vm1081_vm13 = vcmp.lt.s32.totalorder %v1080_v24, 0 }
  0xb7   :  { %v238_v25 = vor.u32 4788187, %v237_v21  ;;  %v241_v20 = vcvt.s32.f32 %v234_v17  ;;  %v126_v27 = vsel %vm1081_vm13, 0, %v1080_v24  ;;  %vm357_vm9 = vcmp.lt.s32.totalorder %v356_v43, 2 }
  0xb8   :  { %v127_v32 = vsub.s32 32, %v126_v27  ;;  %v131_v33 = vsub.s32 4294967266, %v126_v27  ;;  %v128_v58 = vshll.u32 %v119_v53, %v126_v27  ;;  %v252_v53 = vadd.s32 3, %v248_v44 }
  0xb9   :  { %v239_v26 = vand.u32 2147483647, %v238_v25  ;;  %vm361_vm10 = vcmp.eq.s32.totalorder %v356_v43, 2  ;;  %vm154_vm11 = vcmp.eq.s32.totalorder %v149_v51, 2  ;;  %vm358_vm12 = vcmp.eq.s32.totalorder %v356_v43, 0 }
  0xba   :  { %v129_v34 = vshrl.u32 %v111_v29, %v127_v32  ;;  %v132_v38 = vadd.s32 127, %v131_v33  ;;  %v253_v41 = vand.u32 3, %v252_v53  ;;  %vm151_vm13 = vcmp.eq.s32.totalorder %v149_v51, 0 }
  0xbb   :  { %v242_v54 = vmul.f32 %v241_v20, %v239_v26 }
  0xbc   :  { %v130_v47 = vor.u32 %v129_v34, %v128_v58  ;;  %v133_v48 = vshll.u32 %v132_v38, 23  ;;  %vm255_vm6 = vcmp.eq.s32.totalorder %v253_v41, 0  ;;  %vm258_vm7 = vcmp.eq.s32.totalorder %v253_v41, 2 }
  0xbd   :  { %v243_v46 = vxor.u32 2147483648, %v242_v54  ;;  %vm254_vm8 = vcmp.lt.s32.totalorder %v253_v41, 2 }
  0xbe   :  { %v134_v35 = vor.u32 4788187, %v133_v48  ;;  %v137_v56 = vcvt.s32.f32 %v130_v47 }
  0xbf   :  { %v244_v50 = vsel %vm161_vm14, %v243_v46, %v242_v54  ;;  %vm150_vm14 = vcmp.lt.s32.totalorder %v149_v51, 2 }
  0xc0   :  { %v247_v30 = vsel %vm1453_vm15, %v1246_v12, %v244_v50  ;;  %v135_v52 = vand.u32 2147483647, %v134_v35  ;;  %vm147_vm15 = vweird.f32 %v1244_v11 }
  0xc1   :  { %1135 = vcosq.f32 %v247_v30 }
  0xc2   :  { %1137 = vsinq.f32 %v247_v30  ;;  %v138_v57 = vmul.f32 %v137_v56, %v135_v52  ;;  %v34_v56 = vld [vmem:[%s1571_s0] sm:$0x3] }
  0xc3   :  { %v521_v18 = vrot.slane %v34_v56, %v45_v5 }
  0xc4   :  { %v139_v59 = vxor.u32 2147483648, %v138_v57 }
  0xc6   :  { %v140_v60 = vsel %vm57_vm0, %v139_v59, %v138_v57  ;;  %vm544_vm0 = vcmask 130048  }
  0xc7   :  { %v143_v61 = vsel %vm56_vm1, %v1244_v11, %v140_v60  ;;  %v510_v11 = vpop.permute.xlu1 %509  ;;  %v525_v60 = vrot.slane %v34_v56, %v49_v6  ;;  %vm810_vm1 = vcmask 523264  }
  0xc8   :  { %1139 = vcosq.f32 %v143_v61 }
  0xc9   :  { %1141 = vsinq.f32 %v143_v61  ;;  %v541_v0 = vmul.f32 %v525_v60, %v510_v11 }
  0xce   :  { %v1136_v8 = vpop.eup %1135 }
  0xcf   :  { %v1138_v39 = vpop.eup %1137  ;;  %v259_v1 = vxor.u32 2147483648, %v1136_v8 }
  0xd0   :  { %v256_v37 = vxor.u32 2147483648, %v1138_v39 }
  0xd1   :  { %v466_v45 = vsel %vm464_vm2, %v259_v1, %v1138_v39  ;;  %v260_v24 = vsel %vm258_vm7, %v259_v1, %v1138_v39  ;;  %vm1061_vm2 = vcmp.lt.s32.totalorder %v43_v3, 256 }
  0xd2   :  { %v463_v55 = vsel %vm461_vm3, %v1136_v8, %v256_v37  ;;  %v257_v21 = vsel %vm255_vm6, %v1136_v8, %v256_v37  ;;  %v540_v8 = vmul.f32 %v521_v18, %v510_v11 }
  0xd3   :  { %v467_v10 = vsel %vm460_vm4, %v463_v55, %v466_v45  ;;  %v261_v29 = vsel %vm254_vm8, %v257_v21, %v260_v24 }
  0xd4   :  { %v468_v62 = vsel %vm251_vm5, nan, %v467_v10  ;;  %v262_v34 = vsel %vm251_vm5, nan, %v261_v29 }
  0xd5   :  { %589 = vmatprep.subr.mxu0 %v468_v62  ;;  %v1140_v15 = vpop.eup %1139 }
  0xd6   :  { %v1142_v16 = vpop.eup %1141  ;;  %v155_v17 = vxor.u32 2147483648, %v1140_v15 }
  0xd7   :  { %v152_v25 = vxor.u32 2147483648, %v1142_v16 }
  0xd8   :  { %v363_v26 = vsel %vm361_vm10, %v155_v17, %v1142_v16  ;;  %v156_v20 = vsel %vm154_vm11, %v155_v17, %v1142_v16 }
  0xd9   :  { %v360_v27 = vsel %vm358_vm12, %v1140_v15, %v152_v25  ;;  %v153_v32 = vsel %vm151_vm13, %v1140_v15, %v152_v25 }
  0xda   :  { %v364_v33 = vsel %vm357_vm9, %v360_v27, %v363_v26  ;;  %v157_v54 = vsel %vm150_vm14, %v153_v32, %v156_v20 }
  0xdb   :  { %v365_v58 = vsel %vm147_vm15, nan, %v364_v33  ;;  %v158_v38 = vsel %vm147_vm15, nan, %v157_v54 }
  0xdc   :  { %590 = vmatpush1.msra.mxu0 %v365_v58 }
  0xdd   :  { %591 = vmatprep.subr.mxu0 %v262_v34 }
  0xde   :  { %592 = vmatpush1.msra.mxu0 %v158_v38 }
  0xdf   :  { %1094 = vmatmul.mubr.msk.f32.vlgmr.msra.gmra.mxu0 %vm544_vm0, %v1340_v28 }
  0xe0   :  { %631 = vmatprep.mubr.f32.mxu0 %v1166_v2 }
  0xe3   :  { %1095 = vmatmul.mubr.msk.f32.gmra.mxu0 %vm544_vm0, %v1326_v63 }
  0xe4   :  { %637 = vmatprep.mubr.f32.mxu0 %v1166_v2 }
  0xe7   :  { %1096 = vmatmul.mubr.msk.f32.gmra.mxu0 %vm544_vm0, %v1300_v40 }
  0xe8   :  { %643 = vmatprep.mubr.f32.mxu0 %v1166_v2 }
  0xeb   :  { %1097 = vmatmul.mubr.msk.f32.gmra.mxu0 %vm544_vm0, %v1286_v31 }
  0xec   :  { %649 = vmatprep.mubr.f32.mxu0 %v1166_v2 }
  0xef   :  { %1098 = vmatmul.mubr.msk.f32.gmra.mxu0 %vm544_vm0, %v1267_v22  ;;  %v505_v22 = vpop.permute.xlu1 %504 }
  0xf0   :  { %655 = vmatprep.mubr.f32.mxu0 %v1166_v2  ;;  %v539_v53 = vmul.f32 %v525_v60, %v505_v22  ;;  %v538_v55 = vmul.f32 %v521_v18, %v505_v22 }
  0xf3   :  { %1099 = vmatmul.mubr.msk.f32.gmra.mxu0 %vm544_vm0, %v1272_v23  ;;  %v515_v23 = vpop.permute.xlu0 %514  ;;  %v720_v28 = vpop.permute.xlu1 %719 }
  0xf4   :  { %661 = vmatprep.mubr.f32.mxu0 %v1166_v2  ;;  %v542_v7 = vmul.f32 %v521_v18, %v515_v23  ;;  %v543_v9 = vmul.f32 %v525_v60, %v515_v23 }
  0xf7   :  { %1100 = vmatmul.mubr.msk.f32.gmra.mxu0 %vm544_vm0, %v1251_v13  ;;  %v500_v47 = vpop.permute.xlu0 %499 }
  0xf8   :  { %667 = vmatprep.mubr.f32.mxu0 %v1166_v2  ;;  %v537_v1 = vmul.f32 %v525_v60, %v500_v47  ;;  %v536_v10 = vmul.f32 %v521_v18, %v500_v47 }
  0xfb   :  { %1101 = vmatmul.mubr.msk.f32.gmra.mxu0 %vm544_vm0, %v1256_v14  ;;  %v715_v14 = vpop.permute.xlu1 %714  ;;  %v495_v30 = vpop.permute.xlu0 %494 }
  0xfc   :  { %1034 = vmatprep.mubr.f32.mxu0 %v1166_v2  ;;  %v535_v5 = vmul.f32 %v525_v60, %v495_v30  ;;  %v534_v15 = vmul.f32 %v521_v18, %v495_v30 }
  0xff   :  { %v710_v36 = vpop.permute.xlu1 %709  ;;  %v490_v42 = vpop.permute.xlu0 %489 }
 0x100   :  { %v533_v21 = vmul.f32 %v525_v60, %v490_v42  ;;  %v532_v20 = vmul.f32 %v521_v18, %v490_v42 }
 0x103   :  { %v705_v44 = vpop.permute.xlu1 %704  ;;  %v485_v37 = vpop.permute.xlu0 %484 }
 0x104   :  { %v531_v32 = vmul.f32 %v525_v60, %v485_v37  ;;  %v530_v38 = vmul.f32 %v521_v18, %v485_v37 }
 0x107   :  { %v480_v33 = vpop.permute.xlu0 %479 }
 0x108   :  { %v529_v30 = vmul.f32 %v525_v60, %v480_v33 }
 0x10c   :  { %v700_v43 = vpop.permute.xlu1 %699 }
 0x10d   :  { %v690_v60 = vpop.permute.xlu0 %689 }
 0x110   :  { %v695_v47 = vpop.permute.xlu1 %694 }
 0x19f   :  { %v1498_v12 = vpop.f32.mrf.mxu0 }
 0x1a1   :  { %v1500_v31 = vpop.f32.mrf.mxu0 }
 0x1a3   :  { %v1502_v40 = vpop.f32.mrf.mxu0 }
 0x1a5   :  { %v1504_v63 = vpop.f32.mrf.mxu0 }
 0x1a7   :  { %v1506_v13 = vpop.f32.mrf.mxu0 }
 0x1a9   :  { %v641_v46 = vpop.f32.mrf.mxu0 }
 0x1ab   :  { %v645_v48 = vpop.f32.mrf.mxu0 }
 0x1ac   :  { %v646_v11 = vadd.f32 %v645_v48, %v534_v15  ;;  %v634_v48 = vadd.f32 %v1502_v40, %v530_v38  ;;  %v761_v15 = vld [vmem:[%s1576_s5 + $0x38] sm:$0xff] }
 0x1ad   :  { %v647_v49 = vpop.f32.mrf.mxu0 }
 0x1ae   :  { %v648_v54 = vadd.f32 %v647_v49, %v535_v5  ;;  %v636_v49 = vadd.f32 %v1504_v63, %v531_v32  ;;  %v685_v63 = vpop.permute.xlu1 %684  ;;  %v757_v5 = vld [vmem:[%s1576_s5 + $0x18] sm:$0xff] }
 0x1af   :  { %v651_v50 = vpop.f32.mrf.mxu0 }
 0x1b0   :  { %v652_v27 = vadd.f32 %v651_v50, %v536_v10  ;;  %v729_v42 = vadd.f32 %v700_v43, %v648_v54  ;;  %v754_v10 = vld [vmem:[%s1576_s5] sm:$0xff] }
 0x1b1   :  { %v653_v35 = vpop.f32.mrf.mxu0 }
 0x1b2   :  { %v654_v24 = vadd.f32 %v653_v35, %v537_v1  ;;  %v528_v35 = vmul.f32 %v521_v18, %v480_v33  ;;  %v730_v50 = vadd.f32 %v705_v44, %v652_v27  ;;  %v808_v54 = vpop.permute.xlu1 %807 }
 0x1b3   :  { %v657_v52 = vpop.f32.mrf.mxu0 }
 0x1b4   :  { %v658_v16 = vadd.f32 %v657_v52, %v538_v55  ;;  %v642_v52 = vadd.f32 %v641_v46, %v533_v21  ;;  %v731_v56 = vadd.f32 %v705_v44, %v654_v24  ;;  %v630_v46 = vadd.f32 %v1500_v31, %v529_v30 }
 0x1b5   :  { %v659_v57 = vpop.f32.mrf.mxu0 }
 0x1b6   :  { %v660_v51 = vadd.f32 %v659_v57, %v539_v53  ;;  %v732_v22 = vadd.f32 %v710_v36, %v658_v16  ;;  %v747_v18 = vmax.f32 %v731_v56, 0.0  ;;  %v723_v53 = vadd.f32 %v685_v63, %v630_v46 }
 0x1b7   :  { %v663_v59 = vpop.f32.mrf.mxu0 }
 0x1b8   :  { %v664_v41 = vadd.f32 %v663_v59, %v540_v8  ;;  %v733_v58 = vadd.f32 %v710_v36, %v660_v51  ;;  %v728_v36 = vadd.f32 %v700_v43, %v646_v11  ;;  %v725_v8 = vadd.f32 %v690_v60, %v636_v49  ;;  %v758_v43 = vld [vmem:[%s1576_s5 + $0x20] sm:$0xff]  ;;  %v759_v51 = vld [vmem:[%s1576_s5 + $0x28] sm:$0xff]  ;;  %v798_v11 = vpop.permute.xlu1 %797 }
 0x1b9   :  { %v665_v61 = vpop.f32.mrf.mxu0 }
 0x1ba   :  { %v666_v45 = vadd.f32 %v665_v61, %v541_v0  ;;  %v734_v29 = vadd.f32 %v715_v14, %v664_v41  ;;  %v749_v59 = vmax.f32 %v733_v58, 0.0  ;;  %v748_v61 = vmax.f32 %v732_v22, 0.0  ;;  %v755_v41 = vld [vmem:[%s1576_s5 + $0x8] sm:$0xff] }
 0x1bb   :  { %v669_v39 = vpop.f32.mrf.mxu0  ;;  %v727_v0 = vadd.f32 %v695_v47, %v642_v52  ;;  %v744_v40 = vmax.f32 %v728_v36, 0.0 }
 0x1bc   :  { %v670_v19 = vadd.f32 %v669_v39, %v542_v7  ;;  %v735_v25 = vadd.f32 %v715_v14, %v666_v45  ;;  %v750_v14 = vmax.f32 %v734_v29, 0.0  ;;  %v746_v7 = vmax.f32 %v730_v50, 0.0  ;;  %v788_v50 = vpop.permute.xlu1 %787 }
 0x1bd   :  { %v671_v62 = vpop.f32.mrf.mxu0  ;;  %v724_v39 = vadd.f32 %v690_v60, %v634_v48  ;;  %v743_v1 = vmax.f32 %v727_v0, 0.0  ;;  %v741_v45 = vmax.f32 %v725_v8, 0.0 }
 0x1be   :  { %v672_v6 = vadd.f32 %v671_v62, %v543_v9  ;;  %v736_v17 = vadd.f32 %v720_v28, %v670_v19  ;;  %v751_v57 = vmax.f32 %v735_v25, 0.0  ;;  %v745_v9 = vmax.f32 %v729_v42, 0.0  ;;  %v756_v62 = vld [vmem:[%s1576_s5 + $0x10] sm:$0xff] }
 0x1bf   :  { %v740_v19 = vmax.f32 %v724_v39, 0.0 }
 0x1c0   :  { %v737_v26 = vadd.f32 %v720_v28, %v672_v6  ;;  %v752_v23 = vmax.f32 %v736_v17, 0.0  ;;  %v640_v28 = vadd.f32 %v1506_v13, %v532_v20  ;;  %v628_v13 = vadd.f32 %v1498_v12, %v528_v35  ;;  %v760_v6 = vld [vmem:[%s1576_s5 + $0x30] sm:$0xff] }
 0x1c1   :  { %v739_v12 = vmax.f32 %v723_v53, 0.0 }
 0x1c2   :  { %v753_v34 = vmax.f32 %v737_v26, 0.0  ;;  %v726_v44 = vadd.f32 %v695_v47, %v640_v28  ;;  %v722_v31 = vadd.f32 %v685_v63, %v628_v13 }
 0x1c4   :  { %851 = vmatprep.subr.mxu1 %v753_v34  ;;  %v742_v37 = vmax.f32 %v726_v44, 0.0  ;;  %v738_v55 = vmax.f32 %v722_v31, 0.0 }
 0x1c5   :  { %852 = vmatpush1.msra.mxu1 %v752_v23 }
 0x1c6   :  { %853 = vmatprep.subr.mxu1 %v751_v57 }
 0x1c7   :  { %854 = vmatpush1.msra.mxu1 %v750_v14 }
 0x1c8   :  { %855 = vmatprep.subr.mxu1 %v749_v59 }
 0x1c9   :  { %856 = vmatpush1.msra.mxu1 %v748_v61 }
 0x1ca   :  { %857 = vmatprep.subr.mxu1 %v747_v18 }
 0x1cb   :  { %858 = vmatpush1.msra.mxu1 %v746_v7  ;;  %v778_v7 = vpop.permute.xlu1 %777 }
 0x1cc   :  { %859 = vmatprep.subr.mxu1 %v745_v9 }
 0x1cd   :  { %860 = vmatpush1.msra.mxu1 %v744_v40 }
 0x1ce   :  { %861 = vmatprep.subr.mxu1 %v743_v1 }
 0x1cf   :  { %862 = vmatpush1.msra.mxu1 %v742_v37 }
 0x1d0   :  { %863 = vmatprep.subr.mxu1 %v741_v45 }
 0x1d1   :  { %864 = vmatpush1.msra.mxu1 %v740_v19 }
 0x1d2   :  { %865 = vmatprep.subr.mxu1 %v739_v12 }
 0x1d3   :  { %866 = vmatpush1.msra.mxu1 %v738_v55 }
 0x1d4   :  { %1102 = vmatmul.mubr.msk.f32.vlgmr.msra.gmra.mxu1 %vm810_vm1, %v754_v10 }
 0x1d5   :  { %905 = vmatprep.mubr.f32.mxu1 %v1166_v2 }
 0x1d8   :  { %1103 = vmatmul.mubr.msk.f32.gmra.mxu1 %vm810_vm1, %v755_v41 }
 0x1d9   :  { %911 = vmatprep.mubr.f32.mxu1 %v1166_v2 }
 0x1dc   :  { %1104 = vmatmul.mubr.msk.f32.gmra.mxu1 %vm810_vm1, %v756_v62  ;;  %v964_v62 = vld [vmem:[%s1578_s7] sm:$0x1]  ;;  %s1070_s7 = sshll.u32 %s1175_s28, 4  ;;  %s1071_s7 = int_to_ptr.vmem [resolvable:$true] %s1070_s7 }
 0x1dd   :  { %917 = vmatprep.mubr.f32.mxu1 %v1166_v2  ;;  %s1143_s29 = scalar_lea.vmem %s1071_s7, 32  ;;  %p1148_p1 = scmp.lt.s32.totalorder %s1071_s7, %s1071_s7 }
 0x1de   :  { %p1144_p0 = scmp.ne.s32.totalorder %s1071_s7, %s1143_s29  ;;  %p1149_p2 = scmp.lt.s32.totalorder %s1143_s29, %s1143_s29 }
 0x1e0   :  { %1105 = vmatmul.mubr.msk.f32.gmra.mxu1 %vm810_vm1, %v757_v5  ;;  %v1174_v5 = vmov 1966171168   ;;  %p1150_p3 = por %p1149_p2, %p1148_p1 }
 0x1e1   :  { %923 = vmatprep.mubr.f32.mxu1 %v1166_v2 }
 0x1e2   :  { %p1151_p4 = pnand %p1150_p3, %p1144_p0 }
 0x1e4   :  { %1106 = vmatmul.mubr.msk.f32.gmra.mxu1 %vm810_vm1, %v758_v43  ;;  %v1045_v43 = vunpack.c.l.s4 %v1174_v5 }
 0x1e5   :  { %929 = vmatprep.mubr.f32.mxu1 %v1166_v2 }
 0x1e8   :  { %1107 = vmatmul.mubr.msk.f32.gmra.mxu1 %vm810_vm1, %v759_v51  ;;  %v1046_v51 = vunpack.c.0.s8 %v1045_v43 }
 0x1e9   :  { %935 = vmatprep.mubr.f32.mxu1 %v1166_v2 }
 0x1ec   :  { %1108 = vmatmul.mubr.msk.f32.gmra.mxu1 %vm810_vm1, %v760_v6  ;;  %v966_v6 = vstv %s1579_s8 }
 0x1ed   :  { %941 = vmatprep.mubr.f32.mxu1 %v1166_v2  ;;  %v803_v2 = vpop.permute.xlu0 %802 }
 0x1f0   :  { %1109 = vmatmul.mubr.msk.f32.gmra.mxu1 %vm810_vm1, %v761_v15 }
 0x1f1   :  { %v793_v23 = vpop.permute.xlu0 %792 }
 0x1f5   :  { %v783_v48 = vpop.permute.xlu0 %782 }
 0x1f9   :  { %v773_v40 = vpop.permute.xlu0 %772 }
 0x294   :  { %v901_v16 = vpop.f32.mrf.mxu1 }
 0x295   :  { %v902_v45 = vadd.f32 %v901_v16, %v773_v40 }
 0x296   :  { %v903_v17 = vpop.f32.mrf.mxu1 }
 0x297   :  { %v904_v31 = vadd.f32 %v903_v17, %v773_v40  ;;  %v948_v41 = vmax.f32 %v902_v45, 0.0 }
 0x298   :  { %v907_v21 = vpop.f32.mrf.mxu1 }
 0x299   :  { %v908_v53 = vadd.f32 %v907_v21, %v778_v7  ;;  %v949_v10 = vmax.f32 %v904_v31, 0.0 }
 0x29a   :  { %v909_v24 = vpop.f32.mrf.mxu1 }
 0x29b   :  { %v910_v9 = vadd.f32 %v909_v24, %v778_v7  ;;  %v950_v55 = vmax.f32 %v908_v53, 0.0  ;;  %v1049_v24 = vsub.s32 %v1046_v51, %v1233_v4 }
 0x29c   :  { %v913_v25 = vpop.f32.mrf.mxu1 }
 0x29d   :  { %v914_v63 = vadd.f32 %v913_v25, %v783_v48  ;;  %v951_v12 = vmax.f32 %v910_v9, 0.0 }
 0x29e   :  { %v915_v26 = vpop.f32.mrf.mxu1 }
 0x29f   :  { %v916_v13 = vadd.f32 %v915_v26, %v783_v48  ;;  %v952_v19 = vmax.f32 %v914_v63, 0.0 }
 0x2a0   :  { %v919_v20 = vpop.f32.mrf.mxu1 }
 0x2a1   :  { %v920_v0 = vadd.f32 %v919_v20, %v788_v50  ;;  %v953_v37 = vmax.f32 %v916_v13, 0.0 }
 0x2a2   :  { %v921_v27 = vpop.f32.mrf.mxu1 }
 0x2a3   :  { %v922_v46 = vadd.f32 %v921_v27, %v788_v50  ;;  %v954_v1 = vmax.f32 %v920_v0, 0.0 }
 0x2a4   :  { %v925_v29 = vpop.f32.mrf.mxu1 }
 0x2a5   :  { %v926_v36 = vadd.f32 %v925_v29, %v793_v23  ;;  %v955_v39 = vmax.f32 %v922_v46, 0.0 }
 0x2a6   :  { %v927_v32 = vpop.f32.mrf.mxu1 }
 0x2a7   :  { %v928_v42 = vadd.f32 %v927_v32, %v793_v23  ;;  %v956_v8 = vmax.f32 %v926_v36, 0.0 }
 0x2a8   :  { %v931_v33 = vpop.f32.mrf.mxu1 }
 0x2a9   :  { %v932_v14 = vadd.f32 %v931_v33, %v798_v11  ;;  %v957_v44 = vmax.f32 %v928_v42, 0.0 }
 0x2aa   :  { %v933_v58 = vpop.f32.mrf.mxu1 }
 0x2ab   :  { %v934_v35 = vadd.f32 %v933_v58, %v798_v11  ;;  %v958_v18 = vmax.f32 %v932_v14, 0.0 }
 0x2ac   :  { %v937_v34 = vpop.f32.mrf.mxu1 }
 0x2ad   :  { %v938_v57 = vadd.f32 %v937_v34, %v803_v2  ;;  %v959_v60 = vmax.f32 %v934_v35, 0.0 }
 0x2ae   :  { %v939_v38 = vpop.f32.mrf.mxu1 }
 0x2af   :  { %v940_v52 = vadd.f32 %v939_v38, %v803_v2  ;;  %v960_v61 = vmax.f32 %v938_v57, 0.0 }
 0x2b0   :  { %v943_v22 = vpop.f32.mrf.mxu1 }
 0x2b1   :  { %v944_v47 = vadd.f32 %v943_v22, %v808_v54  ;;  %v961_v59 = vmax.f32 %v940_v52, 0.0 }
 0x2b2   :  { %v945_v30 = vpop.f32.mrf.mxu1 }
 0x2b3   :  { %v946_v56 = vadd.f32 %v945_v30, %v808_v54  ;;  %v962_v49 = vmax.f32 %v944_v47, 0.0 }
 0x2b5   :  { %v963_v28 = vmax.f32 %v946_v56, 0.0 }
 0x2b7   :  { %986 = vmatprep.subr.mxu0 %v963_v28 }
 0x2b8   :  { %987 = vmatpush1.msra.mxu0 %v962_v49 }
 0x2b9   :  { %988 = vmatprep.subr.mxu0 %v961_v59 }
 0x2ba   :  { %989 = vmatpush1.msra.mxu0 %v960_v61 }
 0x2bb   :  { %990 = vmatprep.subr.mxu0 %v959_v60 }
 0x2bc   :  { %991 = vmatpush1.msra.mxu0 %v958_v18 }
 0x2bd   :  { %992 = vmatprep.subr.mxu0 %v957_v44 }
 0x2be   :  { %993 = vmatpush1.msra.mxu0 %v956_v8 }
 0x2bf   :  { %994 = vmatprep.subr.mxu0 %v955_v39 }
 0x2c0   :  { %995 = vmatpush1.msra.mxu0 %v954_v1 }
 0x2c1   :  { %996 = vmatprep.subr.mxu0 %v953_v37 }
 0x2c2   :  { %997 = vmatpush1.msra.mxu0 %v952_v19 }
 0x2c3   :  { %998 = vmatprep.subr.mxu0 %v951_v12 }
 0x2c4   :  { %999 = vmatpush1.msra.mxu0 %v950_v55 }
 0x2c5   :  { %1000 = vmatprep.subr.mxu0 %v949_v10 }
 0x2c6   :  { %1001 = vmatpush1.msra.mxu0 %v948_v41 }
 0x2c7   :  { %1110 = vmatmul.mubr.msk.f32.vlgmr.msra.gmra.mxu0 %vm810_vm1, %v964_v62 }
 0x387   :  { %v1036_v15 = vpop.f32.mrf.mxu0 }
 0x388   :  { %v1037_v17 = vadd.f32 %v1036_v15, %v966_v6 }
 0x389   :  { %v1038_v16 = vpop.f32.mrf.mxu0 }
 0x38a   :  { %v1039_v21 = vadd.f32 %v1038_v16, %v966_v6 }
 0x38c   :  { %v1043_v25 = vcombine.low %v1037_v17, %v1039_v21 }
 0x38e   :  { %v1050_v26 = vrot.slane %v1043_v25, %v1049_v24 }
 0x390   :  { %v1057_v20 = vrot.slane %v1050_v26, %v1049_v24 }
 0x392   :  { %1063 = vst.msk [vmem:[#allocation3] sm:$0x3] %vm1061_vm2, %v1057_v20 }
 0x393   :  { %1154 = shalt.err (!%p1151_p4)
}
 0x394   :  { %1073 = dma.vmem_to_hbm [thread:$0]  %s1071_s7, 32, %s1580_s9, [#allocation4]  }
 0x395   :  { %1163 = dma.done.wait [#allocation4], 32  }
 0x396   :  { %1164 = vsyncadd [#allocation4], 4294967264 }
 0x397   :  { %1077 = vsyncpa [#allocation4], 1 }

</bundles_post_ra>
